<compile_context>
chip_gen: v7x
topology: tpu7x:2x2x1
jax: 0.10.0
libtpu: 0.0.40
codegen_flags: <defaults>
</compile_context>

<pallas_src>
import jax
import jax.numpy as jnp
from jax.experimental import pallas as pl
from jax.experimental.pallas import tpu as pltpu


_VMEM_LIMIT_BYTES = 48 * 1024 * 1024      # > v5e/v6e scoped defaults, < v7x 64 MiB physical
_MAX_A_BYTES = 16 * 1024 * 1024           # cap on the resident (L, L) averaging matrix


def _round_up(n, m):
    return ((n + m - 1) // m) * m


def _build_avg_matrix(seq_len, kernel_size):
    """(L, L) f32 matrix: mean = A @ x, edge replication folded into cols 0 / L-1."""
    pad = (kernel_size - 1) // 2
    t = jnp.arange(seq_len)[:, None]          # output time index
    s = jnp.arange(seq_len)[None, :]          # input time index
    w = (jnp.abs(s - t) <= pad).astype(jnp.float32)           # in-range window taps
    n0 = jnp.maximum(pad - t[:, 0], 0).astype(jnp.float32)    # taps clamped to row 0
    nl = jnp.maximum(t[:, 0] - (seq_len - 1 - pad), 0).astype(jnp.float32)  # clamped to L-1
    w = w.at[:, 0].add(n0)
    w = w.at[:, seq_len - 1].add(nl)
    return w / float(kernel_size)


def _lane_budget_cap(seq_len, itemsize, a_bytes, budget_bytes):
    """Max lane-tile width (multiple of 128) that keeps the pipeline under budget."""
    # per lane column: double-buffered input + 2 double-buffered outputs + f32 temps
    per_lane = seq_len * (2 * itemsize + 4 * itemsize + 2 * 4)
    avail = max(budget_bytes - 2 * a_bytes, per_lane * 128)
    return max(128, (avail // per_lane) // 128 * 128)


def _pick_channel_block(channels, cap):
    """Largest multiple-of-128 divisor of channels that is <= cap (channels % 128 == 0)."""
    best = 128
    d = 256
    while d <= min(channels, cap):
        if channels % d == 0:
            best = d
        d += 128
    return best


def _pick_folded_block(n_lanes, cap):
    """(lane_block, padded_lanes) for the folded (L, B*C) layout."""
    n128 = _round_up(n_lanes, 128)
    if n128 <= cap:
        lb = n128
        half = n128 // 2
        # >= 2 tiles (when it costs no padding) so both v7x TensorCores get work
        if n128 >= 256 and half % 128 == 0 and half <= cap:
            lb = half
        return lb, n128
    # n128 > cap: pick the tile in [cap/2, cap] that minimizes zero padding
    best_lb, best_pad = cap, _round_up(n128, cap)
    lb = cap - 128
    while lb >= max(256, cap // 2):
        padded = _round_up(n128, lb)
        if padded < best_pad:
            best_lb, best_pad = lb, padded
        lb -= 128
    return best_lb, best_pad


def _decomp_kernel(a_ref, x_ref, res_ref, mean_ref):
    # a_ref: (L, L) f32 averaging matrix (resident; same block every grid step)
    # x_ref / res_ref / mean_ref: (L, lanes) time x (channel or folded batch*channel)
    xf = x_ref[...].astype(jnp.float32)                       # widen once per block
    mean = jnp.dot(a_ref[...], xf,
                   preferred_element_type=jnp.float32,
                   precision=jax.lax.Precision.HIGHEST)       # MXU, f32-accurate
    mean_ref[...] = mean.astype(mean_ref.dtype)
    res_ref[...] = (xf - mean).astype(res_ref.dtype)


def _call_natural(a, x, ct):
    """Natural (B, L, C) layout; grid over (batch, channel tiles)."""
    B, L, C = x.shape
    xspec = pl.BlockSpec((None, L, ct), lambda b, c: (b, 0, c))
    return pl.pallas_call(
        _decomp_kernel,
        out_shape=(jax.ShapeDtypeStruct((B, L, C), x.dtype),
                   jax.ShapeDtypeStruct((B, L, C), x.dtype)),
        grid_spec=pltpu.PrefetchScalarGridSpec(
            num_scalar_prefetch=0,
            grid=(B, C // ct),
            in_specs=[pl.BlockSpec((L, L), lambda b, c: (0, 0)), xspec],
            out_specs=[xspec, xspec],
        ),
        compiler_params=pltpu.CompilerParams(
            dimension_semantics=("parallel", "parallel"),
            vmem_limit_bytes=_VMEM_LIMIT_BYTES),
    )(a, x)


def _call_folded(a, x2, lb):
    """Folded (L, B*C) lane-dense layout; grid over lane tiles."""
    L, n_pad = x2.shape
    xspec = pl.BlockSpec((L, lb), lambda j: (0, j))
    return pl.pallas_call(
        _decomp_kernel,
        out_shape=(jax.ShapeDtypeStruct((L, n_pad), x2.dtype),
                   jax.ShapeDtypeStruct((L, n_pad), x2.dtype)),
        grid_spec=pltpu.PrefetchScalarGridSpec(
            num_scalar_prefetch=0,
            grid=(n_pad // lb,),
            in_specs=[pl.BlockSpec((L, L), lambda j: (0, 0)), xspec],
            out_specs=[xspec, xspec],
        ),
        compiler_params=pltpu.CompilerParams(
            dimension_semantics=("parallel",),
            vmem_limit_bytes=_VMEM_LIMIT_BYTES),
    )(a, x2)


def series_decomp(x, kernel_size, *, lane_block_target=1024,
                  vmem_budget_bytes=40 * 1024 * 1024):
    """x: (B, L, C). Returns (res, moving_mean), each (B, L, C)."""
    if kernel_size % 2 == 0:
        # Even K would also break the PyTorch module (length mismatch in x - mean).
        raise ValueError("series_decomp requires an odd kernel_size")
    B, L, C = x.shape
    a_bytes = L * L * 4
    # TODO(synk): very long sequences need halo time-tiling; the resident (L, L)
    # averaging matrix and full-L blocks cap L here (fine for Autoformer L <= 720).
    if a_bytes > _MAX_A_BYTES:
        raise ValueError("series_decomp pallas kernel supports seq_len up to ~2048")

    a = _build_avg_matrix(L, kernel_size)
    itemsize = jnp.dtype(x.dtype).itemsize
    cap = min(max(128, (lane_block_target // 128) * 128),
              _lane_budget_cap(L, itemsize, a_bytes, vmem_budget_bytes))

    if C % 128 == 0:
        # Natural layout path: zero wrapper-level re-layout copies.
        ct = _pick_channel_block(C, cap)
        return _call_natural(a, x, ct)

    # Small / awkward channel count: fold batch*channel onto the 128-wide lane axis.
    N = B * C
    x2 = jnp.transpose(x, (1, 0, 2)).reshape(L, N)
    lb, n_pad = _pick_folded_block(N, cap)
    if n_pad != N:
        x2 = jnp.pad(x2, ((0, 0), (0, n_pad - N)))
    res2, mean2 = _call_folded(a, x2, lb)
    res = jnp.transpose(res2[:, :N].reshape(L, B, C), (1, 0, 2))
    mean = jnp.transpose(mean2[:, :N].reshape(L, B, C), (1, 0, 2))
    return res, mean


def _reference(x, kernel_size):
    # pure-JAX reference mirroring the PyTorch forward
    pad = (kernel_size - 1) // 2
    front = jnp.repeat(x[:, 0:1, :], pad, axis=1)
    end = jnp.repeat(x[:, -1:, :], pad, axis=1)
    xpad = jnp.concatenate([front, x, end], axis=1)
    L = x.shape[1]
    windows = jnp.stack([xpad[:, k:k + L, :] for k in range(kernel_size)], axis=0)
    mean = jnp.mean(windows, axis=0)
    return x - mean, mean


if __name__ == "__main__":
    key = jax.random.PRNGKey(0)
    configs = [
        # (B, L, C, K)
        (2, 8, 4, 5),      # tiny folded-layout sanity case
        (3, 25, 7, 25),    # folded layout, K=25, L not 8-aligned
        (8, 32, 96, 5),    # folded layout, B*C = 768 -> 2 lane tiles (parallel grid)
        (2, 16, 128, 5),   # natural (B, L, C) layout path, C = 128
        (2, 12, 256, 25),  # natural path, pad >= L (heavy edge clamping)
    ]
    for i, (B, L, C, K) in enumerate(configs):
        key, sub = jax.random.split(key)
        x = jax.random.normal(sub, (B, L, C), dtype=jnp.float32)

        res, mean = series_decomp(x, K)
        res = jax.block_until_ready(res)
        mean = jax.block_until_ready(mean)

        res_ref, mean_ref = _reference(x, K)
        assert jnp.allclose(mean, mean_ref, atol=1e-5, rtol=1e-5), f"mean mismatch cfg {i}"
        assert jnp.allclose(res, res_ref, atol=1e-5, rtol=1e-5), f"res mismatch cfg {i}"
        assert jnp.allclose(res + mean, x, atol=1e-5, rtol=1e-5), f"decomp mismatch cfg {i}"

    print("KERNEL_OK")
</pallas_src>

<mosaic_0001>
module attributes {stable_mosaic.version = 11 : i64} {
  func.func @_decomp_kernel(%arg0: i32, %arg1: memref<8x8xf32, #tpu.memory_space<vmem>>, %arg2: memref<8x128xf32, #tpu.memory_space<vmem>>, %arg3: memref<8x128xf32, #tpu.memory_space<vmem>>, %arg4: memref<8x128xf32, #tpu.memory_space<vmem>>) attributes {dimension_semantics = [#tpu.dimension_semantics<parallel>], iteration_bounds = array<i64: 1>, scalar_prefetch = 0 : i64, scratch_operands = 0 : i64, tpu.core_type = #tpu.core_type<tc>, window_params = [{pipeline_mode = #tpu.pipeline_mode<synchronous>, transform_indices = @transform_0, window_bounds = array<i64: 8, 8>}, {transform_indices = @transform_1, window_bounds = array<i64: 8, 128>}, {transform_indices = @transform_2, window_bounds = array<i64: 8, 128>}, {transform_indices = @transform_3, window_bounds = array<i64: 8, 128>}]} {
    %c0 = arith.constant 0 : index
    %c0_0 = arith.constant 0 : index
    %0 = vector.load %arg2[%c0, %c0_0] : memref<8x128xf32, #tpu.memory_space<vmem>>, vector<8x128xf32>
    %c0_1 = arith.constant 0 : index
    %c0_2 = arith.constant 0 : index
    %1 = vector.load %arg1[%c0_1, %c0_2] : memref<8x8xf32, #tpu.memory_space<vmem>>, vector<8x8xf32>
    %cst = arith.constant dense<0.000000e+00> : vector<8x128xf32>
    %2 = tpu.matmul %1, %0, %cst {dimension_numbers = #tpu.dot_dimension_numbers<[1], [0], [0], [1], [0, 0, 1, 1], [], []>, precision = #tpu.contract_precision<fp32>} : vector<8x8xf32>, vector<8x128xf32>, vector<8x128xf32> -> vector<8x128xf32>
    %c0_3 = arith.constant 0 : index
    %c0_4 = arith.constant 0 : index
    %3 = vector.load %arg4[%c0_3, %c0_4] : memref<8x128xf32, #tpu.memory_space<vmem>>, vector<8x128xf32>
    tpu.vector_store %arg4[%c0_3, %c0_4], %2 {strides = array<i32>} : memref<8x128xf32, #tpu.memory_space<vmem>>, vector<8x128xf32>,
    %4 = arith.subf %0, %2 : vector<8x128xf32>
    %c0_5 = arith.constant 0 : index
    %c0_6 = arith.constant 0 : index
    %5 = vector.load %arg3[%c0_5, %c0_6] : memref<8x128xf32, #tpu.memory_space<vmem>>, vector<8x128xf32>
    tpu.vector_store %arg3[%c0_5, %c0_6], %4 {strides = array<i32>} : memref<8x128xf32, #tpu.memory_space<vmem>>, vector<8x128xf32>,
    return
  }
  func.func @transform_0(%arg0: i32) -> (i32, i32) {
    %c0_i32 = arith.constant 0 : i32
    %c0_i32_0 = arith.constant 0 : i32
    %c0_i32_1 = arith.constant 0 : i32
    return %c0_i32, %c0_i32_0 : i32, i32
  }
  func.func @transform_1(%arg0: i32) -> (i32, i32) {
    %c0_i32 = arith.constant 0 : i32
    %c0_i32_0 = arith.constant 0 : i32
    return %c0_i32, %arg0 : i32, i32
  }
  func.func @transform_2(%arg0: i32) -> (i32, i32) {
    %c0_i32 = arith.constant 0 : i32
    %c0_i32_0 = arith.constant 0 : i32
    return %c0_i32, %arg0 : i32, i32
  }
  func.func @transform_3(%arg0: i32) -> (i32, i32) {
    %c0_i32 = arith.constant 0 : i32
    %c0_i32_0 = arith.constant 0 : i32
    return %c0_i32, %arg0 : i32, i32
  }
}

</mosaic_0001>

<bundles_post_ra>
// kernel: tpu_custom_call.1
= control target key start
LH: loop header
LB: loop body
LE: loop exit
PB: predicated region body
PF: predicated region fallthrough
CT: control target
= control target key end

     0   :  { %9 = vsyncpa [#allocation3], 0  ;;  %s757_s0 = inlined_call_operand.hbm [shape: f32[8,8], index: 0, kind: input, shape index: {}]   ;;  %s758_s1 = inlined_call_operand.hbm [shape: f32[8,128], index: 1, kind: input, shape index: {}]   ;;  %s759_s2 = inlined_call_operand.hbm [shape: f32[8,128], index: 2, kind: output, shape index: {0}]   ;;  %s760_s3 = inlined_call_operand.hbm [shape: f32[8,128], index: 3, kind: output, shape index: {1}]  }
   0x1   :  { %10 = vsyncpa [#allocation6], 0 }
   0x2   :  { %11 = vsyncpa [#allocation4], 0 }
   0x3   :  { %12 = vsyncpa [#allocation9], 0  ;;  %s677_s12 = smov [#allocation2]   ;;  %s678_s14 = smov [#allocation5]  }
   0x4   :  { %s19_s13 = sshll.u32 %s677_s12, 4  ;;  %s29_s15 = sshll.u32 %s678_s14, 4  ;;  %s20_s13 = int_to_ptr.vmem [resolvable:$true] %s19_s13  ;;  %s30_s15 = int_to_ptr.vmem [resolvable:$true] %s29_s15 }
   0x5   :  { %s581_s18 = scalar_lea.hbm %s757_s0, 128 }
   0x6   :  { %p582_p0 = scmp.ne.s32.totalorder %s757_s0, %s581_s18  ;;  %p585_p1 = scmp.lt.u32.totalorder %s581_s18, %s757_s0 }
   0x8   :  { %p587_p2 = pnand %p585_p1, %p582_p0 }
   0xa   :  { %590 = shalt.err (!%p587_p2)
}
   0xb   :  { %s591_s23 = scalar_lea.vmem %s20_s13, 128  ;;  %p596_p4 = scmp.lt.s32.totalorder %s20_s13, %s20_s13 }
   0xc   :  { %p592_p3 = scmp.ne.s32.totalorder %s20_s13, %s591_s23  ;;  %p597_p5 = scmp.lt.s32.totalorder %s591_s23, %s591_s23 }
   0xe   :  { %p598_p6 = por %p597_p5, %p596_p4 }
  0x10   :  { %p599_p7 = pnand %p598_p6, %p592_p3 }
  0x12   :  { %602 = shalt.err (!%p599_p7)
}
  0x13   :  { %22 = dma.hbm_to_vmem [thread:$0]  %s757_s0, 128, %s20_s13, [#allocation3]  }
  0x14   :  { %s603_s28 = scalar_lea.hbm %s758_s1, 128 }
  0x15   :  { %p604_p8 = scmp.ne.s32.totalorder %s758_s1, %s603_s28  ;;  %p607_p9 = scmp.lt.u32.totalorder %s603_s28, %s758_s1 }
  0x17   :  { %p609_p10 = pnand %p607_p9, %p604_p8 }
  0x19   :  { %612 = shalt.err (!%p609_p10)
}
  0x1a   :  { %s613_s6 = scalar_lea.vmem %s30_s15, 128  ;;  %p618_p12 = scmp.lt.s32.totalorder %s30_s15, %s30_s15 }
  0x1b   :  { %p614_p11 = scmp.ne.s32.totalorder %s30_s15, %s613_s6  ;;  %p619_p13 = scmp.lt.s32.totalorder %s613_s6, %s613_s6 }
  0x1d   :  { %p620_p0 = por %p619_p13, %p618_p12 }
  0x1f   :  { %p621_p1 = pnand %p620_p0, %p614_p11 }
  0x21   :  { %624 = shalt.err (!%p621_p1)
}
  0x22   :  { %32 = dma.hbm_to_vmem [thread:$0]  %s758_s1, 128, %s30_s15, [#allocation6]  }
  0x23   :  { %669 = dma.done.wait [#allocation3], 128  }
  0x24   :  { %670 = vsyncadd [#allocation3], 4294967168 }
  0x25   :  { %671 = dma.done.wait [#allocation6], 128  }
  0x26   :  { %672 = vsyncadd [#allocation6], 4294967168  ;;  %v679_v0 = vmov 0.0   ;;  %vm680_vm0 = vmmov 0   ;;  %vm41_vm1 = vcmask 64512   ;;  %v39_v1 = vld [vmem:[#allocation5] sm:$0xff] }
  0x27   :  { %551 = vmatprep.subr.mxu0 %v679_v0  ;;  %553 = vmatprep.mubr.msk.f32.mxu0 %vm680_vm0, %v679_v0  ;;  %v40_v2 = vld [vmem:[#allocation2] sm:$0xff]  ;;  %v46_v3 = vand.u32 4294901760, %v39_v1  ;;  %s681_s1 = smov [#allocation8]   ;;  %s682_s9 = smov [#allocation7]  }
  0x28   :  { %536 = vmatprep.subr.mxu1 %v679_v0  ;;  %538 = vmatprep.mubr.msk.f32.mxu1 %vm680_vm0, %v679_v0  ;;  %v43_v4 = vsel %vm41_vm1, %v40_v2, 0  ;;  %s510_s8 = sshll.u32 %s681_s1, 4  ;;  %s500_s10 = sshll.u32 %s682_s9, 4  ;;  %s511_s8 = int_to_ptr.vmem [resolvable:$true] %s510_s8  ;;  %s501_s10 = int_to_ptr.vmem [resolvable:$true] %s500_s10 }
  0x29   :  { %v111_v5 = vand.u32 4294901760, %v43_v4  ;;  %v123_v6 = vsub.f32 %v39_v1, %v46_v3  ;;  %552 = vmatpush3.msra.mxu0 %v46_v3  ;;  %537 = vmatpush3.msra.mxu1 %v46_v3  ;;  %s625_s11 = scalar_lea.vmem %s511_s8, 128  ;;  %p630_p3 = scmp.lt.s32.totalorder %s511_s8, %s511_s8 }
  0x2a   :  { %541 = vmatprep.subr.mxu1 %v679_v0  ;;  %556 = vmatprep.subr.mxu0 %v679_v0  ;;  %p626_p2 = scmp.ne.s32.totalorder %s511_s8, %s625_s11  ;;  %p631_p4 = scmp.lt.s32.totalorder %s625_s11, %s625_s11 }
  0x2b   :  { %v112_v7 = vsub.f32 %v43_v4, %v111_v5  ;;  %v124_v8 = vand.u32 4294901760, %v123_v6 }
  0x2c   :  { %p632_p5 = por %p631_p4, %p630_p3 }
  0x2d   :  { %v113_v9 = vand.u32 4294901760, %v112_v7  ;;  %v125_v10 = vsub.f32 %v123_v6, %v124_v8 }
  0x2e   :  { %p633_p6 = pnand %p632_p5, %p626_p2 }
  0x2f   :  { %554 = vmatmul.mubr.f32.vlgmr.msra.gmra.mrb[0].mxu0 %v113_v9  ;;  %v114_v11 = vsub.f32 %v112_v7, %v113_v9  ;;  %v126_v12 = vand.u32 4294901760, %v125_v10 }
  0x30   :  { %557 = vmatpush3.msra.mxu0 %v124_v8  ;;  %558 = vmatprep.mubr.msk.f32.mxu0 %vm680_vm0, %v679_v0 }
  0x31   :  { %v115_v13 = vand.u32 4294901760, %v114_v11  ;;  %561 = vmatprep.subr.mxu0 %v679_v0 }
  0x33   :  { %539 = vmatmul.mubr.f32.vlgmr.msra.gmra.mrb[0].mxu1 %v115_v13 }
  0x34   :  { %542 = vmatpush3.msra.mxu1 %v126_v12  ;;  %543 = vmatprep.mubr.msk.f32.mxu1 %vm680_vm0, %v679_v0 }
  0x35   :  { %546 = vmatprep.subr.mxu1 %v679_v0 }
  0x37   :  { %559 = vmatmul.mubr.f32.vlgmr.msra.gmra.mrb[0].mxu0 %v111_v5 }
  0x38   :  { %562 = vmatpush3.msra.mxu0 %v46_v3  ;;  %563 = vmatprep.mubr.msk.f32.mxu0 %vm680_vm0, %v679_v0 }
  0x3b   :  { %544 = vmatmul.mubr.f32.vlgmr.msra.gmra.mrb[0].mxu1 %v111_v5 }
  0x3c   :  { %547 = vmatpush3.msra.mxu1 %v123_v6  ;;  %548 = vmatprep.mubr.msk.f32.mxu1 %vm680_vm0, %v679_v0 }
  0x3f   :  { %564 = vmatmul.mubr.f32.vlgmr.msra.gmra.mrb[0].mxu0 %v111_v5 }
  0x43   :  { %549 = vmatmul.mubr.f32.vlgmr.msra.gmra.mrb[0].mxu1 %v112_v7 }
 0x112   :  { %v487_v14 = vpop.f32.mrb[0].mxu0 }
 0x113   :  { %v565_v15 = vpop.f32.mrb[1].mxu0 }
 0x116   :  { %v267_v16 = vpop.f32.mrb[0].mxu1 }
 0x117   :  { %v566_v17 = vadd.f32 %v487_v14, %v267_v16  ;;  %v550_v18 = vpop.f32.mrb[1].mxu1 }
 0x119   :  { %v492_v19 = vsub.f32 %v39_v1, %v566_v17  ;;  %491 = vst [vmem:[#allocation8] sm:$0xff] %v566_v17 }
 0x11a   :  { %636 = shalt.err (!%p633_p6)
}
 0x11b   :  { %s637_s14 = scalar_lea.hbm %s760_s3, 128 }
 0x11c   :  { %p638_p7 = scmp.ne.s32.totalorder %s760_s3, %s637_s14  ;;  %p641_p8 = scmp.lt.u32.totalorder %s637_s14, %s760_s3 }
 0x11e   :  { %p643_p9 = pnand %p641_p8, %p638_p7 }
 0x120   :  { %646 = shalt.err (!%p643_p9)
}
 0x121   :  { %513 = dma.vmem_to_hbm [thread:$0]  %s511_s8, 128, %s760_s3, [#allocation9]   ;;  %493 = vst [vmem:[#allocation7] sm:$0xff] %v492_v19 }
 0x122   :  { %s647_s21 = scalar_lea.vmem %s501_s10, 128  ;;  %p652_p11 = scmp.lt.s32.totalorder %s501_s10, %s501_s10 }
 0x123   :  { %p648_p10 = scmp.ne.s32.totalorder %s501_s10, %s647_s21  ;;  %p653_p12 = scmp.lt.s32.totalorder %s647_s21, %s647_s21 }
 0x125   :  { %p654_p13 = por %p653_p12, %p652_p11 }
 0x127   :  { %p655_p0 = pnand %p654_p13, %p648_p10 }
 0x129   :  { %658 = shalt.err (!%p655_p0)
}
 0x12a   :  { %s659_s24 = scalar_lea.hbm %s759_s2, 128 }
 0x12b   :  { %p660_p1 = scmp.ne.s32.totalorder %s759_s2, %s659_s24  ;;  %p663_p2 = scmp.lt.u32.totalorder %s659_s24, %s759_s2 }
 0x12d   :  { %p665_p3 = pnand %p663_p2, %p660_p1 }
 0x12f   :  { %668 = shalt.err (!%p665_p3)
}
 0x130   :  { %503 = dma.vmem_to_hbm [thread:$0]  %s501_s10, 128, %s759_s2, [#allocation4]  }
 0x131   :  { %673 = dma.done.wait [#allocation4], 128  }
 0x132   :  { %674 = vsyncadd [#allocation4], 4294967168 }
 0x133   :  { %675 = dma.done.wait [#allocation9], 128  }
 0x134   :  { %676 = vsyncadd [#allocation9], 4294967168 }
 0x135   :  { %520 = vsyncpa [#allocation3], 1 }
 0x136   :  { %521 = vsyncpa [#allocation6], 1 }
 0x137   :  { %522 = vsyncpa [#allocation4], 1 }
 0x138   :  { %523 = vsyncpa [#allocation9], 1 }

</bundles_post_ra>
